<compile_context>
chip_gen: v6e
topology: v6e:2x2x1
jax: 0.10.0
libtpu: 0.0.40
codegen_flags: <defaults>
</compile_context>

<pallas_src>
import functools

import jax
import jax.numpy as jnp
from jax.experimental import pallas as pl
from jax.experimental.pallas import tpu as pltpu

_NEG_LARGE = -1e30  # drives padded class lanes to ~-inf so softmax ignores them


def _round_up(x, m):
    return (x + m - 1) // m * m


def fc_softmax_kernel(x_ref, w_ref, b_ref, o_ref):
    # fc: (TB, Fp) @ (Fp, Cp) on the MXU (bf16 operands, f32 accumulation).
    logits = jnp.dot(x_ref[...], w_ref[...],
                     preferred_element_type=jnp.float32) + b_ref[...]
    # Numerically-stable softmax over the lane-dense (padded) class axis; padded
    # class lanes carry a -1e30 bias so exp() zeroes them out.
    m = jnp.max(logits, axis=-1, keepdims=True)
    e = jnp.exp(logits - m)
    denom = jnp.sum(e, axis=-1, keepdims=True)
    # Exact reciprocal (still a single EUP op): rows sum to 1 to f32 accuracy.
    o_ref[...] = (e * pl.reciprocal(denom, approx=False)).astype(o_ref.dtype)


def prepare_head_params(w, b):
    """Pad + cast the fc parameters once, outside the per-call hot path.

    w: (num_ftrs, num_classes) -- stored (in, out), i.e. PyTorch fc.weight.T
    b: (num_classes,) or (1, num_classes)
    """
    F, C = w.shape
    Fp, Cp = _round_up(F, 128), _round_up(C, 128)
    wp = jnp.zeros((Fp, Cp), jnp.bfloat16).at[:F, :C].set(w.astype(jnp.bfloat16))
    bp = jnp.full((1, Cp), _NEG_LARGE, jnp.float32).at[:, :C].set(
        jnp.reshape(b, (1, C)).astype(jnp.float32))
    return wp, bp


@functools.partial(jax.jit, static_argnames=("num_classes", "block_b", "out_dtype",
                                             "single_buffer_weights"))
def simclr_head_forward(feats, wp, bp, *, num_classes, block_b=512,
                        out_dtype=jnp.bfloat16, single_buffer_weights=True):
    """softmax(flatten(AdaptiveAvgPool2d(1)(feats)) @ W + b, dim=1).

    feats: (B, num_ftrs, H, W) backbone feature maps (NCHW, like PyTorch), or an
           already-pooled (B, num_ftrs) activation.
    wp, bp: padded parameters from prepare_head_params.
    """
    if feats.ndim == 4:
        # AdaptiveAvgPool2d(1) + view(B, -1); the bf16 cast fuses into the reduce.
        x = jnp.mean(feats.astype(jnp.float32), axis=(2, 3)).astype(jnp.bfloat16)
    else:
        x = feats.astype(jnp.bfloat16)
    B, F = x.shape
    Fp, Cp = wp.shape
    out_itemsize = jnp.dtype(out_dtype).itemsize

    # ---- batch tiling -------------------------------------------------------
    TB = min(block_b, _round_up(B, 8))
    if B > 8 and pl.cdiv(B, TB) < 2:
        # >= 2 balanced grid steps so the "parallel" axis can shard across both
        # v7x TensorCores (no effect on single-TC v5e/v6e).
        TB = _round_up(pl.cdiv(B, 2), 8)

    # ---- VMEM budget: per-chip cap + headroom for Mosaic internal scratch ----
    try:
        vmem_cap = int(pltpu.get_tpu_info().vmem_capacity_bytes)
    except Exception:
        vmem_cap = 64 * 2 ** 20  # conservative: smallest (v7x) generation
    vmem_budget = (vmem_cap * 3) // 4

    n_wbuf = 1 if single_buffer_weights else 2

    def _vmem_est(tb):
        return (2 * tb * Fp * 2                   # double-buffered x tiles (bf16)
                + 2 * tb * Cp * out_itemsize      # double-buffered out tiles
                + n_wbuf * (Fp * Cp * 2 + Cp * 4)  # resident weight + bias
                + tb * Cp * 3 * 4)                # f32 logits / exp / softmax temps

    while TB > 8 and _vmem_est(TB) > vmem_budget:
        TB = _round_up(TB // 2, 8)
    Bp = _round_up(B, TB)
    vmem_limit = int(min(vmem_budget, max(32 * 2 ** 20, 2 * _vmem_est(TB))))

    # ---- pad x only when needed (skipped for aligned ResNet F=512/2048) ------
    if (B != Bp) or (F != Fp):
        xk = jnp.zeros((Bp, Fp), jnp.bfloat16).at[:B, :F].set(x)
    else:
        xk = x

    resident = {"pipeline_mode": pl.Buffered(1)} if single_buffer_weights else {}

    cost = pl.CostEstimate(
        flops=2 * Bp * Fp * Cp,
        transcendentals=Bp * Cp,
        bytes_accessed=Bp * Fp * 2 + Fp * Cp * 2 + Cp * 4 + Bp * Cp * out_itemsize,
    )

    out = pl.pallas_call(
        fc_softmax_kernel,
        out_shape=jax.ShapeDtypeStruct((Bp, Cp), out_dtype),
        grid=(Bp // TB,),
        in_specs=[
            pl.BlockSpec((TB, Fp), lambda i: (i, 0)),               # streamed x
            pl.BlockSpec((Fp, Cp), lambda i: (0, 0), **resident),   # resident W
            pl.BlockSpec((1, Cp), lambda i: (0, 0), **resident),    # resident b
        ],
        out_specs=pl.BlockSpec((TB, Cp), lambda i: (i, 0)),
        compiler_params=pltpu.CompilerParams(
            dimension_semantics=("parallel",),
            vmem_limit_bytes=vmem_limit,
            allow_input_fusion=[True, False, False],
        ),
        cost_estimate=cost,
    )(xk, wp, bp)
    return out[:B, :num_classes]


def init_fc_params(key, num_ftrs, num_classes):
    # Mirrors nn.Linear init: U(-1/sqrt(fan_in), 1/sqrt(fan_in)); stored (in, out).
    kw, kb = jax.random.split(key)
    lim = 1.0 / (num_ftrs ** 0.5)
    w = jax.random.uniform(kw, (num_ftrs, num_classes), jnp.float32, -lim, lim)
    b = jax.random.uniform(kb, (num_classes,), jnp.float32, -lim, lim)
    return w, b


if __name__ == "__main__":
    key = jax.random.PRNGKey(0)
    kf, kp, kf2 = jax.random.split(key, 3)

    # Small shapes consistent with the module: backbone feature maps (B, C, H, W),
    # fc: num_ftrs -> num_classes.
    B, NF, HS, WS, NC = 4, 32, 4, 4, 10
    feats = jax.random.normal(kf, (B, NF, HS, WS), jnp.float32)
    w, b = init_fc_params(kp, NF, NC)
    wp, bp = prepare_head_params(w, b)

    def run(f, wpad, bpad):
        try:
            y = simclr_head_forward(f, wpad, bpad, num_classes=NC)
        except Exception:
            # Fallback for toolchains without per-BlockSpec pipeline_mode support.
            y = simclr_head_forward(f, wpad, bpad, num_classes=NC,
                                    single_buffer_weights=False)
        return jax.block_until_ready(y)

    out = run(feats, wp, bp)

    # Reference (same bf16 matmul operands / f32 accumulation as the kernel).
    def ref_fn(f, w_, b_):
        x = jnp.mean(f, axis=(2, 3)).astype(jnp.bfloat16)
        logits = jnp.dot(x, w_.astype(jnp.bfloat16),
                         preferred_element_type=jnp.float32) + b_[None, :]
        return jax.nn.softmax(logits, axis=1)

    ref = ref_fn(feats, w, b)
    out_f32 = out.astype(jnp.float32)
    assert out.shape == (B, NC)
    assert jnp.allclose(out_f32, ref, atol=2e-2, rtol=0.0)
    assert jnp.allclose(jnp.sum(out_f32, axis=1), 1.0, atol=3e-2)

    # Second call: larger batch + 128-aligned num_ftrs exercises the no-pad fast
    # path and a >= 2-step grid (v7x megacore sharding).
    B2, NF2 = 16, 256
    w2, b2 = init_fc_params(kp, NF2, NC)
    wp2, bp2 = prepare_head_params(w2, b2)
    feats2 = jax.random.normal(kf2, (B2, NF2, HS, WS), jnp.float32)
    out2 = run(feats2, wp2, bp2)
    ref2 = ref_fn(feats2, w2, b2)
    assert out2.shape == (B2, NC)
    assert jnp.allclose(out2.astype(jnp.float32), ref2, atol=2e-2, rtol=0.0)

    print("KERNEL_OK")
</pallas_src>

<mosaic_0001>
module attributes {stable_mosaic.version = 11 : i64} {
  func.func @fc_softmax_kernel(%arg0: i32, %arg1: memref<8x128xbf16, #tpu.memory_space<vmem>>, %arg2: memref<128x128xbf16, #tpu.memory_space<vmem>>, %arg3: memref<1x128xf32, #tpu.memory_space<vmem>>, %arg4: memref<8x128xbf16, #tpu.memory_space<vmem>>) attributes {dimension_semantics = [#tpu.dimension_semantics<parallel>], iteration_bounds = array<i64: 1>, scalar_prefetch = 0 : i64, scratch_operands = 0 : i64, tpu.core_type = #tpu.core_type<tc>, window_params = [{transform_indices = @transform_0, window_bounds = array<i64: 8, 128>}, {pipeline_mode = #tpu.pipeline_mode<synchronous>, transform_indices = @transform_1, window_bounds = array<i64: 128, 128>}, {pipeline_mode = #tpu.pipeline_mode<synchronous>, transform_indices = @transform_2, window_bounds = array<i64: 1, 128>}, {transform_indices = @transform_3, window_bounds = array<i64: 8, 128>}]} {
    %c0 = arith.constant 0 : index
    %c0_0 = arith.constant 0 : index
    %0 = vector.load %arg1[%c0, %c0_0] : memref<8x128xbf16, #tpu.memory_space<vmem>>, vector<8x128xbf16>
    %c0_1 = arith.constant 0 : index
    %c0_2 = arith.constant 0 : index
    %1 = vector.load %arg2[%c0_1, %c0_2] : memref<128x128xbf16, #tpu.memory_space<vmem>>, vector<128x128xbf16>
    %cst = arith.constant dense<0.000000e+00> : vector<8x128xf32>
    %2 = tpu.matmul %0, %1, %cst {dimension_numbers = #tpu.dot_dimension_numbers<[1], [0], [0], [1], [0, 0, 1, 1], [], []>} : vector<8x128xbf16>, vector<128x128xbf16>, vector<8x128xf32> -> vector<8x128xf32>
    %c0_3 = arith.constant 0 : index
    %c0_4 = arith.constant 0 : index
    %3 = vector.load %arg3[%c0_3, %c0_4] : memref<1x128xf32, #tpu.memory_space<vmem>>, vector<1x128xf32>
    %4 = vector.broadcast %3 : vector<1x128xf32> to vector<8x128xf32>
    %5 = arith.addf %2, %4 : vector<8x128xf32>
    %cst_5 = arith.constant dense<0xFF800000> : vector<8xf32>
    %6 = vector.multi_reduction <maximumf>, %5, %cst_5 [1] : vector<8x128xf32> to vector<8xf32>
    %7 = vector.shape_cast %6 : vector<8xf32> to vector<8x1xf32>
    %8 = vector.broadcast %7 : vector<8x1xf32> to vector<8x128xf32>
    %9 = arith.subf %5, %8 : vector<8x128xf32>
    %10 = math.exp %9 : vector<8x128xf32>
    %cst_6 = arith.constant dense<0.000000e+00> : vector<8xf32>
    %11 = vector.multi_reduction <add>, %10, %cst_6 [1] : vector<8x128xf32> to vector<8xf32>
    %12 = vector.shape_cast %11 : vector<8xf32> to vector<8x1xf32>
    %13 = tpu.reciprocal %12 : vector<8x1xf32> -> vector<8x1xf32>
    %14 = vector.broadcast %13 : vector<8x1xf32> to vector<8x128xf32>
    %15 = arith.mulf %10, %14 : vector<8x128xf32>
    %16 = arith.truncf %15 : vector<8x128xf32> to vector<8x128xbf16>
    %c0_7 = arith.constant 0 : index
    %c0_8 = arith.constant 0 : index
    %17 = vector.load %arg4[%c0_7, %c0_8] : memref<8x128xbf16, #tpu.memory_space<vmem>>, vector<8x128xbf16>
    tpu.vector_store %arg4[%c0_7, %c0_8], %16 {strides = array<i32>} : memref<8x128xbf16, #tpu.memory_space<vmem>>, vector<8x128xbf16>,
    return
  }
  func.func @transform_0(%arg0: i32) -> (i32, i32) {
    %c0_i32 = arith.constant 0 : i32
    %c0_i32_0 = arith.constant 0 : i32
    return %arg0, %c0_i32 : i32, i32
  }
  func.func @transform_1(%arg0: i32) -> (i32, i32) {
    %c0_i32 = arith.constant 0 : i32
    %c0_i32_0 = arith.constant 0 : i32
    %c0_i32_1 = arith.constant 0 : i32
    return %c0_i32, %c0_i32_0 : i32, i32
  }
  func.func @transform_2(%arg0: i32) -> (i32, i32) {
    %c0_i32 = arith.constant 0 : i32
    %c0_i32_0 = arith.constant 0 : i32
    %c0_i32_1 = arith.constant 0 : i32
    return %c0_i32, %c0_i32_0 : i32, i32
  }
  func.func @transform_3(%arg0: i32) -> (i32, i32) {
    %c0_i32 = arith.constant 0 : i32
    %c0_i32_0 = arith.constant 0 : i32
    return %arg0, %c0_i32 : i32, i32
  }
}

module attributes {stable_mosaic.version = 11 : i64} {
  func.func @fc_softmax_kernel(%arg0: i32, %arg1: memref<8x128xbf16, #tpu.memory_space<vmem>>, %arg2: memref<128x128xbf16, #tpu.memory_space<vmem>>, %arg3: memref<1x128xf32, #tpu.memory_space<vmem>>, %arg4: memref<8x128xbf16, #tpu.memory_space<vmem>>) attributes {dimension_semantics = [#tpu.dimension_semantics<parallel>], iteration_bounds = array<i64: 1>, scalar_prefetch = 0 : i64, scratch_operands = 0 : i64, tpu.core_type = #tpu.core_type<tc>, window_params = [{transform_indices = @transform_0, window_bounds = array<i64: 8, 128>}, {pipeline_mode = #tpu.pipeline_mode<synchronous>, transform_indices = @transform_1, window_bounds = array<i64: 128, 128>}, {pipeline_mode = #tpu.pipeline_mode<synchronous>, transform_indices = @transform_2, window_bounds = array<i64: 1, 128>}, {transform_indices = @transform_3, window_bounds = array<i64: 8, 128>}]} {
    %c0 = arith.constant 0 : index
    %c0_0 = arith.constant 0 : index
    %0 = vector.load %arg1[%c0, %c0_0] : memref<8x128xbf16, #tpu.memory_space<vmem>>, vector<8x128xbf16>
    %c0_1 = arith.constant 0 : index
    %c0_2 = arith.constant 0 : index
    %1 = vector.load %arg2[%c0_1, %c0_2] : memref<128x128xbf16, #tpu.memory_space<vmem>>, vector<128x128xbf16>
    %cst = arith.constant dense<0.000000e+00> : vector<8x128xf32>
    %2 = tpu.matmul %0, %1, %cst {dimension_numbers = #tpu.dot_dimension_numbers<[1], [0], [0], [1], [0, 0, 1, 1], [], []>} : vector<8x128xbf16>, vector<128x128xbf16>, vector<8x128xf32> -> vector<8x128xf32>
    %c0_3 = arith.constant 0 : index
    %c0_4 = arith.constant 0 : index
    %3 = vector.load %arg3[%c0_3, %c0_4] : memref<1x128xf32, #tpu.memory_space<vmem>>, vector<1x128xf32>
    %4 = vector.broadcast %3 : vector<1x128xf32> to vector<8x128xf32>
    %5 = arith.addf %2, %4 : vector<8x128xf32>
    %cst_5 = arith.constant dense<0xFF800000> : vector<8xf32>
    %6 = vector.multi_reduction <maximumf>, %5, %cst_5 [1] : vector<8x128xf32> to vector<8xf32>
    %7 = vector.shape_cast %6 : vector<8xf32> to vector<8x1xf32>
    %8 = vector.broadcast %7 : vector<8x1xf32> to vector<8x128xf32>
    %9 = arith.subf %5, %8 : vector<8x128xf32>
    %10 = math.exp %9 : vector<8x128xf32>
    %cst_6 = arith.constant dense<0.000000e+00> : vector<8xf32>
    %11 = vector.multi_reduction <add>, %10, %cst_6 [1] : vector<8x128xf32> to vector<8xf32>
    %12 = vector.shape_cast %11 : vector<8xf32> to vector<8x1xf32>
    %13 = tpu.reciprocal %12 : vector<8x1xf32> -> vector<8x1xf32>
    %14 = vector.broadcast %13 : vector<8x1xf32> to vector<8x128xf32>
    %15 = arith.mulf %10, %14 : vector<8x128xf32>
    %16 = arith.truncf %15 : vector<8x128xf32> to vector<8x128xbf16>
    %c0_7 = arith.constant 0 : index
    %c0_8 = arith.constant 0 : index
    %17 = vector.load %arg4[%c0_7, %c0_8] : memref<8x128xbf16, #tpu.memory_space<vmem>>, vector<8x128xbf16>
    tpu.vector_store %arg4[%c0_7, %c0_8], %16 {strides = array<i32>} : memref<8x128xbf16, #tpu.memory_space<vmem>>, vector<8x128xbf16>,
    return
  }
  func.func @transform_0(%arg0: i32) -> (i32, i32) {
    %c0_i32 = arith.constant 0 : i32
    %c0_i32_0 = arith.constant 0 : i32
    return %arg0, %c0_i32 : i32, i32
  }
  func.func @transform_1(%arg0: i32) -> (i32, i32) {
    %c0_i32 = arith.constant 0 : i32
    %c0_i32_0 = arith.constant 0 : i32
    %c0_i32_1 = arith.constant 0 : i32
    return %c0_i32, %c0_i32_0 : i32, i32
  }
  func.func @transform_2(%arg0: i32) -> (i32, i32) {
    %c0_i32 = arith.constant 0 : i32
    %c0_i32_0 = arith.constant 0 : i32
    %c0_i32_1 = arith.constant 0 : i32
    return %c0_i32, %c0_i32_0 : i32, i32
  }
  func.func @transform_3(%arg0: i32) -> (i32, i32) {
    %c0_i32 = arith.constant 0 : i32
    %c0_i32_0 = arith.constant 0 : i32
    return %arg0, %c0_i32 : i32, i32
  }
}

</mosaic_0001>

<bundles_post_ra>
// kernel: simclr_head_forward.2
= control target key start
LH: loop header
LB: loop body
LE: loop exit
PB: predicated region body
PF: predicated region fallthrough
CT: control target
= control target key end

     0   :  { %s286_s0 = inlined_call_operand.vmem [shape: bf16[128,128], index: 0, kind: input, shape index: {}]   ;;  %s287_s1 = inlined_call_operand.vmem [shape: f32[1,128], index: 1, kind: input, shape index: {}]   ;;  %s288_s2 = inlined_call_operand.vmem [shape: bf16[4,32], index: 2, kind: input, shape index: {}]   ;;  %s289_s3 = inlined_call_operand.<no memory space> [shape: bf16[], index: 3, kind: input, shape index: {}]   ;;  %s290_s4 = inlined_call_operand.vmem [shape: bf16[8,128], index: 4, kind: output, shape index: {}]  }
   0x1   :  { %v9_v0 = vstv %s289_s3 }
   0x2   :  { %v10_v1 = vunpack.i.l.bf16 %v9_v0 }
   0x3   :  { %v211_v2 = vld [vmem:[%s286_s0 + $0x38] sm:$0xff]   ;;  %v29_v3 = vlaneseq  ;;  %v223_v4 = vmov 0.0   ;;  %v212_v5 = vld [vmem:[%s286_s0 + $0x30] sm:$0xff]   ;;  %vm224_vm0 = vmmov 0   ;;  %v213_v8 = vld [vmem:[%s286_s0 + $0x28] sm:$0xff]  }
   0x4   :  { %189 = vmatprep.subr.bf16.mxu0 %v223_v4  ;;  %205 = vmatprep.mubr.msk.bf16.mxu0 %vm224_vm0, %v223_v4  ;;  %v26_v9 = vld [vmem:[%s288_s2] sm:$0x3]  ;;  %v215_v15 = vld [vmem:[%s286_s0 + $0x18] sm:$0xff]   ;;  %v216_v16 = vld [vmem:[%s286_s0 + $0x10] sm:$0xff]  }
   0x5   :  { %190 = vmatpush3.bf16.msra.mxu0 %v211_v2  ;;  %v30_v6 = vshrl.u32 %v29_v3, 7  ;;  %v35_v7 = vand.u32 127, %v29_v3  ;;  %v27_v10 = vunpack.c.l.bf16 %v26_v9  ;;  %v214_v11 = vld [vmem:[%s286_s0 + $0x20] sm:$0xff]   ;;  %v217_v17 = vld [vmem:[%s286_s0 + $0x8] sm:$0xff]  }
   0x6   :  { %191 = vmatprep.subr.bf16.mxu0 %v223_v4  ;;  %v218_v18 = vld [vmem:[%s286_s0] sm:$0xff]  }
   0x7   :  { %vm32_vm1 = vcmp.lt.s32.totalorder %v30_v6, 4  ;;  %vm37_vm2 = vcmp.lt.s32.totalorder %v35_v7, 32  ;;  %v171_v20 = vld [vmem:[%s287_s1] ss:$0 sm:$0xff] }
   0x8   :  { %v33_v12 = vsel %vm32_vm1, %v27_v10, %v10_v1 }
   0x9   :  { %192 = vmatpush3.bf16.msra.mxu0 %v212_v5  ;;  %v38_v13 = vsel %vm37_vm2, %v33_v12, %v10_v1 }
   0xa   :  { %193 = vmatprep.subr.bf16.mxu0 %v223_v4  ;;  %v39_v14 = vpack.c.bf16 %v223_v4, %v38_v13 }
   0xc   :  { %42 = vst [vmem:[#allocation7] sm:$0xf] %v39_v14 }
   0xd   :  { %194 = vmatpush3.bf16.msra.mxu0 %v213_v8 }
   0xe   :  { %195 = vmatprep.subr.bf16.mxu0 %v223_v4 }
  0x11   :  { %196 = vmatpush3.bf16.msra.mxu0 %v214_v11 }
  0x12   :  { %197 = vmatprep.subr.bf16.mxu0 %v223_v4 }
  0x13   :  { %v44_v19 = vld [vmem:[#allocation7] sm:$0xf] }
  0x15   :  { %198 = vmatpush3.bf16.msra.mxu0 %v215_v15 }
  0x16   :  { %199 = vmatprep.subr.bf16.mxu0 %v223_v4 }
  0x19   :  { %200 = vmatpush3.bf16.msra.mxu0 %v216_v16 }
  0x1a   :  { %201 = vmatprep.subr.bf16.mxu0 %v223_v4 }
  0x1d   :  { %202 = vmatpush3.bf16.msra.mxu0 %v217_v17 }
  0x1e   :  { %203 = vmatprep.subr.bf16.mxu0 %v223_v4 }
  0x21   :  { %204 = vmatpush3.bf16.msra.mxu0 %v218_v18 }
  0x24   :  { %206 = vmatmul.mubr.bf16.vlgmr.msra.gmra.mxu0 %v44_v19 }
  0xe4   :  { %v150_v21 = vpop.f32.mrf.mxu0 }
  0xe5   :  { %v151_v22 = vadd.f32 %v171_v20, %v150_v21 }
  0xe6   :  { %v207_v23 = vpop.f32.mrf.mxu0 }
  0xe7   :  { %156 = vmax.xlane.f32.xlu0 %v151_v22 }
  0xe8   :  { %v153_v24 = vpop.f32.mrf.mxu0 }
  0xea   :  { %v208_v25 = vpop.f32.mrf.mxu0 }
 0x170   :  { %v157_v26 = vpop.xlane.xlu0 %156 }
 0x171   :  { %v158_v27 = vsub.f32 %v151_v22, %v157_v26 }
 0x173   :  { %v159_v28 = vmul.f32 1.442695, %v158_v27 }
 0x175   :  { %219 = vpow2.f32 %v159_v28 }
 0x182   :  { %v220_v29 = vpop.eup %219 }
 0x183   :  { %161 = vadd.xlane.f32.xlu0 %v220_v29 }
 0x20c   :  { %v162_v30 = vpop.xlane.xlu0 %161 }
 0x20d   :  { %221 = vrcp.f32 %v162_v30 }
 0x21a   :  { %v222_v31 = vpop.eup %221 }
 0x21b   :  { %v164_v32 = vmul.f32 %v222_v31, %v220_v29 }
 0x21d   :  { %v165_v33 = vpack.c.bf16 %v164_v32, %v164_v32 }
 0x21f   :  { %166 = vst [vmem:[%s290_s4] sm:$0xf] %v165_v33 }

// kernel: simclr_head_forward.2
= control target key start
LH: loop header
LB: loop body
LE: loop exit
PB: predicated region body
PF: predicated region fallthrough
CT: control target
= control target key end

     0   :  { %s286_s0 = inlined_call_operand.vmem [shape: bf16[128,128], index: 0, kind: input, shape index: {}]   ;;  %s287_s1 = inlined_call_operand.vmem [shape: f32[1,128], index: 1, kind: input, shape index: {}]   ;;  %s288_s2 = inlined_call_operand.vmem [shape: bf16[4,32], index: 2, kind: input, shape index: {}]   ;;  %s289_s3 = inlined_call_operand.<no memory space> [shape: bf16[], index: 3, kind: input, shape index: {}]   ;;  %s290_s4 = inlined_call_operand.vmem [shape: bf16[8,128], index: 4, kind: output, shape index: {}]  }
   0x1   :  { %v9_v0 = vstv %s289_s3 }
   0x2   :  { %v10_v1 = vunpack.i.l.bf16 %v9_v0 }
   0x3   :  { %v211_v2 = vld [vmem:[%s286_s0 + $0x38] sm:$0xff]   ;;  %v29_v3 = vlaneseq  ;;  %v223_v4 = vmov 0.0   ;;  %v212_v5 = vld [vmem:[%s286_s0 + $0x30] sm:$0xff]   ;;  %vm224_vm0 = vmmov 0   ;;  %v213_v8 = vld [vmem:[%s286_s0 + $0x28] sm:$0xff]  }
   0x4   :  { %189 = vmatprep.subr.bf16.mxu0 %v223_v4  ;;  %205 = vmatprep.mubr.msk.bf16.mxu0 %vm224_vm0, %v223_v4  ;;  %v26_v9 = vld [vmem:[%s288_s2] sm:$0x3]  ;;  %v215_v15 = vld [vmem:[%s286_s0 + $0x18] sm:$0xff]   ;;  %v216_v16 = vld [vmem:[%s286_s0 + $0x10] sm:$0xff]  }
   0x5   :  { %190 = vmatpush3.bf16.msra.mxu0 %v211_v2  ;;  %v30_v6 = vshrl.u32 %v29_v3, 7  ;;  %v35_v7 = vand.u32 127, %v29_v3  ;;  %v27_v10 = vunpack.c.l.bf16 %v26_v9  ;;  %v214_v11 = vld [vmem:[%s286_s0 + $0x20] sm:$0xff]   ;;  %v217_v17 = vld [vmem:[%s286_s0 + $0x8] sm:$0xff]  }
   0x6   :  { %191 = vmatprep.subr.bf16.mxu0 %v223_v4  ;;  %v218_v18 = vld [vmem:[%s286_s0] sm:$0xff]  }
   0x7   :  { %vm32_vm1 = vcmp.lt.s32.totalorder %v30_v6, 4  ;;  %vm37_vm2 = vcmp.lt.s32.totalorder %v35_v7, 32  ;;  %v171_v20 = vld [vmem:[%s287_s1] ss:$0 sm:$0xff] }
   0x8   :  { %v33_v12 = vsel %vm32_vm1, %v27_v10, %v10_v1 }
   0x9   :  { %192 = vmatpush3.bf16.msra.mxu0 %v212_v5  ;;  %v38_v13 = vsel %vm37_vm2, %v33_v12, %v10_v1 }
   0xa   :  { %193 = vmatprep.subr.bf16.mxu0 %v223_v4  ;;  %v39_v14 = vpack.c.bf16 %v223_v4, %v38_v13 }
   0xc   :  { %42 = vst [vmem:[#allocation7] sm:$0xf] %v39_v14 }
   0xd   :  { %194 = vmatpush3.bf16.msra.mxu0 %v213_v8 }
   0xe   :  { %195 = vmatprep.subr.bf16.mxu0 %v223_v4 }
  0x11   :  { %196 = vmatpush3.bf16.msra.mxu0 %v214_v11 }
  0x12   :  { %197 = vmatprep.subr.bf16.mxu0 %v223_v4 }
  0x13   :  { %v44_v19 = vld [vmem:[#allocation7] sm:$0xf] }
  0x15   :  { %198 = vmatpush3.bf16.msra.mxu0 %v215_v15 }
  0x16   :  { %199 = vmatprep.subr.bf16.mxu0 %v223_v4 }
  0x19   :  { %200 = vmatpush3.bf16.msra.mxu0 %v216_v16 }
  0x1a   :  { %201 = vmatprep.subr.bf16.mxu0 %v223_v4 }
  0x1d   :  { %202 = vmatpush3.bf16.msra.mxu0 %v217_v17 }
  0x1e   :  { %203 = vmatprep.subr.bf16.mxu0 %v223_v4 }
  0x21   :  { %204 = vmatpush3.bf16.msra.mxu0 %v218_v18 }
  0x24   :  { %206 = vmatmul.mubr.bf16.vlgmr.msra.gmra.mxu0 %v44_v19 }
  0xe4   :  { %v150_v21 = vpop.f32.mrf.mxu0 }
  0xe5   :  { %v151_v22 = vadd.f32 %v171_v20, %v150_v21 }
  0xe6   :  { %v207_v23 = vpop.f32.mrf.mxu0 }
  0xe7   :  { %156 = vmax.xlane.f32.xlu0 %v151_v22 }
  0xe8   :  { %v153_v24 = vpop.f32.mrf.mxu0 }
  0xea   :  { %v208_v25 = vpop.f32.mrf.mxu0 }
 0x170   :  { %v157_v26 = vpop.xlane.xlu0 %156 }
 0x171   :  { %v158_v27 = vsub.f32 %v151_v22, %v157_v26 }
 0x173   :  { %v159_v28 = vmul.f32 1.442695, %v158_v27 }
 0x175   :  { %219 = vpow2.f32 %v159_v28 }
 0x182   :  { %v220_v29 = vpop.eup %219 }
 0x183   :  { %161 = vadd.xlane.f32.xlu0 %v220_v29 }
 0x20c   :  { %v162_v30 = vpop.xlane.xlu0 %161 }
 0x20d   :  { %221 = vrcp.f32 %v162_v30 }
 0x21a   :  { %v222_v31 = vpop.eup %221 }
 0x21b   :  { %v164_v32 = vmul.f32 %v222_v31, %v220_v29 }
 0x21d   :  { %v165_v33 = vpack.c.bf16 %v164_v32, %v164_v32 }
 0x21f   :  { %166 = vst [vmem:[%s290_s4] sm:$0xf] %v165_v33 }

</bundles_post_ra>
